<compile_context>
chip_gen: v7x
topology: tpu7x:2x2x1
jax: 0.10.0
libtpu: 0.0.40
codegen_flags: <defaults>
</compile_context>

<pallas_src>
import jax
import jax.numpy as jnp
from jax.experimental import pallas as pl
from jax.experimental.pallas import tpu as pltpu


HIDDEN = 256      # per-head hidden width (fixed by the PyTorch module)
K_PAD = 256       # padded layer-1 contraction depth: [state | pad]128 + [action | pad]128


# ----------------------------------------------------------------------------
# Kernel
# ----------------------------------------------------------------------------
def _critic_kernel(state_ref, action_ref,
                   w1p_ref, b14_ref,
                   w2_ref, b2_ref, w5_ref, b5_ref,
                   w3r_ref, w6r_ref, b36_ref,
                   q_ref, sa_ref):
    cd = w1p_ref.dtype                 # MXU input dtype (bfloat16)
    sd = state_ref.shape[-1]
    ad = action_ref.shape[-1]

    # --- Pack [state | 0 | action | 0] into a K=256 lane-aligned slab ---------
    # Offsets 0 and 128 are lane-aligned -> plain masked stores, no relayout.
    # Padding lanes must be zero, so the (cheap, VPU/vst-slot) zero fill is done
    # every grid step (safe under megacore sharding of the batch axis).
    sa_ref[...] = jnp.zeros_like(sa_ref)
    sa_ref[:, :sd] = state_ref[...]
    sa_ref[:, 128:128 + ad] = action_ref[...]
    sa = sa_ref[...].astype(cd)        # (bB, 256) bf16

    # --- Layer 1, both heads fused: one (bB,256) x (256,512) MXU pass ---------
    h12 = jnp.maximum(
        jnp.dot(sa, w1p_ref[...], preferred_element_type=jnp.float32)
        + b14_ref[...], 0.0)           # (bB, 512) f32

    h = h12[:, :HIDDEN].astype(cd)     # Q1 branch (bB, 256) bf16
    g = h12[:, HIDDEN:].astype(cd)     # Q2 branch

    # --- Layer 2 per head (bf16 dot inputs, f32 accumulate / bias / ReLU) -----
    h2 = jnp.maximum(
        jnp.dot(h, w2_ref[...], preferred_element_type=jnp.float32)
        + b2_ref[...], 0.0)            # (bB, 256) f32
    g2 = jnp.maximum(
        jnp.dot(g, w5_ref[...], preferred_element_type=jnp.float32)
        + b5_ref[...], 0.0)

    # --- Layer 3 off the MXU: per-row dot = VPU multiply + XLU lane reduce ----
    q1 = jnp.sum(h2 * w3r_ref[...], axis=-1, keepdims=True)   # (bB, 1) f32
    q2 = jnp.sum(g2 * w6r_ref[...], axis=-1, keepdims=True)

    # Lane-packed (bB, 2) output: col 0 = q1, col 1 = q2.
    q_ref[:, 0:1] = (q1 + b36_ref[:, 0:1]).astype(q_ref.dtype)
    q_ref[:, 1:2] = (q2 + b36_ref[:, 1:2]).astype(q_ref.dtype)


# ----------------------------------------------------------------------------
# Wrapper
# ----------------------------------------------------------------------------
def critic_forward(state, action, packed, *, block_b=1024):
    """Pallas equivalent of Critic.forward: returns (q1, q2), each (B, 1)."""
    B, state_dim = state.shape
    _, action_dim = action.shape

    bB = B if B <= block_b else block_b       # bB == B, or a multiple of 8
    grid = (pl.cdiv(B, bB),)

    row_map = lambda i: (i, 0)                # activations / output: tile batch
    const_map = lambda i: (0, 0)              # weights: stay resident

    weight_names = ("w1p", "b14", "w2", "b2", "w5", "b5", "w3r", "w6r", "b36")

    in_specs = [
        pl.BlockSpec((bB, state_dim), row_map),
        pl.BlockSpec((bB, action_dim), row_map),
    ] + [pl.BlockSpec(packed[n].shape, const_map) for n in weight_names]

    out_specs = pl.BlockSpec((bB, 2), row_map)

    q = pl.pallas_call(
        _critic_kernel,
        out_shape=jax.ShapeDtypeStruct((B, 2), jnp.float32),
        grid=grid,
        in_specs=in_specs,
        out_specs=out_specs,
        scratch_shapes=[pltpu.VMEM((bB, K_PAD), jnp.float32)],   # packed [state|action]
        compiler_params=pltpu.CompilerParams(
            dimension_semantics=("parallel",)),
    )(state, action, *(packed[n] for n in weight_names))

    # split the lane-packed output outside the kernel
    return q[:, 0:1], q[:, 1:2]


# ----------------------------------------------------------------------------
# Parameter init (PyTorch nn.Linear layout) and one-time packing
# ----------------------------------------------------------------------------
def init_params(key, state_dim, action_dim):
    """Weights as (in_features, out_features), biases as (out_features,)."""
    in_dim = state_dim + action_dim
    layers = {"1": (in_dim, 256), "2": (256, 256), "3": (256, 1),
              "4": (in_dim, 256), "5": (256, 256), "6": (256, 1)}
    params = {}
    keys = jax.random.split(key, 2 * len(layers))
    for idx, (name, (fan_in, fan_out)) in enumerate(layers.items()):
        kw, kb = keys[2 * idx], keys[2 * idx + 1]
        bound = 1.0 / (fan_in ** 0.5)
        params[f"w{name}"] = jax.random.uniform(
            kw, (fan_in, fan_out), jnp.float32, -bound, bound)
        params[f"b{name}"] = jax.random.uniform(
            kb, (fan_out,), jnp.float32, -bound, bound)
    return params


def pack_params(p, state_dim, action_dim, *, weight_dtype=jnp.bfloat16):
    """One-time repack into the fused kernel layout.

    w1p is a (256, 512) zero-padded weight: rows [0, sd) hold the state rows of
    [W1 | W4], rows [128, 128+ad) hold the action rows; everything else is zero,
    matching the kernel's lane-aligned [state | 0 | action | 0] input packing.
    """
    assert state_dim <= 128 and action_dim <= 128, "lane-packed layout needs dims <= 128"
    w14 = jnp.concatenate([p["w1"], p["w4"]], axis=1)            # (in_dim, 512)
    w1p = jnp.zeros((K_PAD, 2 * HIDDEN), jnp.float32)
    w1p = w1p.at[:state_dim, :].set(w14[:state_dim])
    w1p = w1p.at[128:128 + action_dim, :].set(w14[state_dim:])
    b14 = jnp.concatenate([p["b1"], p["b4"]], axis=0)[None, :]   # (1, 512)
    b36 = jnp.stack([p["b3"][0], p["b6"][0]])[None, :]           # (1, 2)
    return {
        "w1p": w1p.astype(weight_dtype),
        "b14": b14.astype(jnp.float32),
        "w2": p["w2"].astype(weight_dtype),
        "b2": p["b2"][None, :].astype(jnp.float32),
        "w5": p["w5"].astype(weight_dtype),
        "b5": p["b5"][None, :].astype(jnp.float32),
        "w3r": p["w3"][:, 0][None, :].astype(jnp.float32),       # (1, 256) f32 row
        "w6r": p["w6"][:, 0][None, :].astype(jnp.float32),       # (1, 256) f32 row
        "b36": b36.astype(jnp.float32),
    }


# ----------------------------------------------------------------------------
# References
# ----------------------------------------------------------------------------
def reference_forward_packed(state, action, packed, state_dim, action_dim):
    """Mirrors the kernel math exactly (bf16 dot inputs, f32 accumulate)."""
    cd = packed["w1p"].dtype
    B = state.shape[0]
    sa = jnp.zeros((B, K_PAD), jnp.float32)
    sa = sa.at[:, :state_dim].set(state)
    sa = sa.at[:, 128:128 + action_dim].set(action)
    h12 = jax.nn.relu(
        jnp.dot(sa.astype(cd), packed["w1p"],
                preferred_element_type=jnp.float32) + packed["b14"])
    h, g = h12[:, :HIDDEN].astype(cd), h12[:, HIDDEN:].astype(cd)
    h2 = jax.nn.relu(jnp.dot(h, packed["w2"],
                             preferred_element_type=jnp.float32) + packed["b2"])
    g2 = jax.nn.relu(jnp.dot(g, packed["w5"],
                             preferred_element_type=jnp.float32) + packed["b5"])
    q1 = jnp.sum(h2 * packed["w3r"], axis=-1, keepdims=True) + packed["b36"][:, 0:1]
    q2 = jnp.sum(g2 * packed["w6r"], axis=-1, keepdims=True) + packed["b36"][:, 1:2]
    return q1, q2


def reference_forward_f32(state, action, p):
    """Original PyTorch module semantics in full f32."""
    sa = jnp.concatenate([state, action], axis=1)
    h = jax.nn.relu(sa @ p["w1"] + p["b1"])
    h = jax.nn.relu(h @ p["w2"] + p["b2"])
    q1 = h @ p["w3"] + p["b3"]
    g = jax.nn.relu(sa @ p["w4"] + p["b4"])
    g = jax.nn.relu(g @ p["w5"] + p["b5"])
    q2 = g @ p["w6"] + p["b6"]
    return q1, q2


# ----------------------------------------------------------------------------
if __name__ == "__main__":
    state_dim, action_dim = 17, 6

    key = jax.random.PRNGKey(0)
    k_params, k_state, k_action = jax.random.split(key, 3)

    params = init_params(k_params, state_dim, action_dim)
    packed = pack_params(params, state_dim, action_dim)

    # --- small single-block check -------------------------------------------
    batch = 8
    state = jax.random.normal(k_state, (batch, state_dim), dtype=jnp.float32)
    action = jax.random.normal(k_action, (batch, action_dim), dtype=jnp.float32)

    q1, q2 = critic_forward(state, action, packed)
    jax.block_until_ready((q1, q2))

    q1_p, q2_p = reference_forward_packed(state, action, packed, state_dim, action_dim)
    q1_f, q2_f = reference_forward_f32(state, action, params)

    assert q1.shape == (batch, 1) and q2.shape == (batch, 1)
    # Tight check against a reference using identical (bf16-dot) numerics.
    assert jnp.allclose(q1, q1_p, atol=2e-3, rtol=2e-3)
    assert jnp.allclose(q2, q2_p, atol=2e-3, rtol=2e-3)
    # Loose check against the original f32 module semantics (bf16 rounding only).
    assert jnp.allclose(q1, q1_f, atol=1e-1, rtol=1e-1)
    assert jnp.allclose(q2, q2_f, atol=1e-1, rtol=1e-1)

    # --- multi-step grid check (exercises batch pipelining / resident weights) --
    B2 = 256
    ks2, ka2 = jax.random.split(jax.random.PRNGKey(1), 2)
    state2 = jax.random.normal(ks2, (B2, state_dim), dtype=jnp.float32)
    action2 = jax.random.normal(ka2, (B2, action_dim), dtype=jnp.float32)

    q1b, q2b = critic_forward(state2, action2, packed, block_b=128)   # grid = (2,)
    jax.block_until_ready((q1b, q2b))

    q1b_p, q2b_p = reference_forward_packed(state2, action2, packed, state_dim, action_dim)
    assert q1b.shape == (B2, 1) and q2b.shape == (B2, 1)
    assert jnp.allclose(q1b, q1b_p, atol=2e-3, rtol=2e-3)
    assert jnp.allclose(q2b, q2b_p, atol=2e-3, rtol=2e-3)

    print("KERNEL_OK")
</pallas_src>

<mosaic_0001>
module attributes {stable_mosaic.version = 11 : i64} {
  func.func @_critic_kernel(%arg0: i32, %arg1: memref<8x17xf32, #tpu.memory_space<vmem>>, %arg2: memref<8x6xf32, #tpu.memory_space<vmem>>, %arg3: memref<256x512xbf16, #tpu.memory_space<vmem>>, %arg4: memref<1x512xf32, #tpu.memory_space<vmem>>, %arg5: memref<256x256xbf16, #tpu.memory_space<vmem>>, %arg6: memref<1x256xf32, #tpu.memory_space<vmem>>, %arg7: memref<256x256xbf16, #tpu.memory_space<vmem>>, %arg8: memref<1x256xf32, #tpu.memory_space<vmem>>, %arg9: memref<1x256xf32, #tpu.memory_space<vmem>>, %arg10: memref<1x256xf32, #tpu.memory_space<vmem>>, %arg11: memref<1x2xf32, #tpu.memory_space<vmem>>, %arg12: memref<8x2xf32, #tpu.memory_space<vmem>>, %arg13: memref<8x256xf32, #tpu.memory_space<vmem>>) attributes {dimension_semantics = [#tpu.dimension_semantics<parallel>], iteration_bounds = array<i64: 1>, scalar_prefetch = 0 : i64, scratch_operands = 1 : i64, tpu.core_type = #tpu.core_type<tc>, window_params = [{transform_indices = @transform_0, window_bounds = array<i64: 8, 17>}, {transform_indices = @transform_1, window_bounds = array<i64: 8, 6>}, {pipeline_mode = #tpu.pipeline_mode<synchronous>, transform_indices = @transform_2, window_bounds = array<i64: 256, 512>}, {pipeline_mode = #tpu.pipeline_mode<synchronous>, transform_indices = @transform_3, window_bounds = array<i64: 1, 512>}, {pipeline_mode = #tpu.pipeline_mode<synchronous>, transform_indices = @transform_4, window_bounds = array<i64: 256, 256>}, {pipeline_mode = #tpu.pipeline_mode<synchronous>, transform_indices = @transform_5, window_bounds = array<i64: 1, 256>}, {pipeline_mode = #tpu.pipeline_mode<synchronous>, transform_indices = @transform_6, window_bounds = array<i64: 256, 256>}, {pipeline_mode = #tpu.pipeline_mode<synchronous>, transform_indices = @transform_7, window_bounds = array<i64: 1, 256>}, {pipeline_mode = #tpu.pipeline_mode<synchronous>, transform_indices = @transform_8, window_bounds = array<i64: 1, 256>}, {pipeline_mode = #tpu.pipeline_mode<synchronous>, transform_indices = @transform_9, window_bounds = array<i64: 1, 256>}, {pipeline_mode = #tpu.pipeline_mode<synchronous>, transform_indices = @transform_10, window_bounds = array<i64: 1, 2>}, {transform_indices = @transform_11, window_bounds = array<i64: 8, 2>}]} {
    %cst = arith.constant 0.000000e+00 : f32
    %0 = vector.broadcast %cst : f32 to vector<8x256xf32>
    %c0 = arith.constant 0 : index
    %c0_0 = arith.constant 0 : index
    %1 = vector.load %arg13[%c0, %c0_0] : memref<8x256xf32, #tpu.memory_space<vmem>>, vector<8x256xf32>
    tpu.vector_store %arg13[%c0, %c0_0], %0 {strides = array<i32>} : memref<8x256xf32, #tpu.memory_space<vmem>>, vector<8x256xf32>,
    %c0_1 = arith.constant 0 : index
    %c0_2 = arith.constant 0 : index
    %2 = vector.load %arg1[%c0_1, %c0_2] : memref<8x17xf32, #tpu.memory_space<vmem>>, vector<8x17xf32>
    %c0_3 = arith.constant 0 : index
    %c0_4 = arith.constant 0 : index
    %3 = vector.load %arg13[%c0_3, %c0_4] : memref<8x256xf32, #tpu.memory_space<vmem>>, vector<8x17xf32>
    tpu.vector_store %arg13[%c0_3, %c0_4], %2 {strides = array<i32>} : memref<8x256xf32, #tpu.memory_space<vmem>>, vector<8x17xf32>,
    %c0_5 = arith.constant 0 : index
    %c0_6 = arith.constant 0 : index
    %4 = vector.load %arg2[%c0_5, %c0_6] : memref<8x6xf32, #tpu.memory_space<vmem>>, vector<8x6xf32>
    %c0_7 = arith.constant 0 : index
    %c128 = arith.constant 128 : index
    %5 = vector.load %arg13[%c0_7, %c128] : memref<8x256xf32, #tpu.memory_space<vmem>>, vector<8x6xf32>
    tpu.vector_store %arg13[%c0_7, %c128], %4 {strides = array<i32>} : memref<8x256xf32, #tpu.memory_space<vmem>>, vector<8x6xf32>,
    %c0_8 = arith.constant 0 : index
    %c0_9 = arith.constant 0 : index
    %6 = vector.load %arg13[%c0_8, %c0_9] : memref<8x256xf32, #tpu.memory_space<vmem>>, vector<8x256xf32>
    %7 = arith.truncf %6 : vector<8x256xf32> to vector<8x256xbf16>
    %c0_10 = arith.constant 0 : index
    %c0_11 = arith.constant 0 : index
    %8 = vector.load %arg3[%c0_10, %c0_11] : memref<256x512xbf16, #tpu.memory_space<vmem>>, vector<256x512xbf16>
    %cst_12 = arith.constant dense<0.000000e+00> : vector<8x512xf32>
    %9 = tpu.matmul %7, %8, %cst_12 {dimension_numbers = #tpu.dot_dimension_numbers<[1], [0], [0], [1], [0, 0, 1, 1], [], []>} : vector<8x256xbf16>, vector<256x512xbf16>, vector<8x512xf32> -> vector<8x512xf32>
    %c0_13 = arith.constant 0 : index
    %c0_14 = arith.constant 0 : index
    %10 = vector.load %arg4[%c0_13, %c0_14] : memref<1x512xf32, #tpu.memory_space<vmem>>, vector<1x512xf32>
    %11 = vector.broadcast %10 : vector<1x512xf32> to vector<8x512xf32>
    %12 = arith.addf %9, %11 : vector<8x512xf32>
    %cst_15 = arith.constant 0.000000e+00 : f32
    %13 = vector.broadcast %cst_15 : f32 to vector<8x512xf32>
    %14 = arith.maximumf %12, %13 : vector<8x512xf32>
    %15 = vector.extract_strided_slice %14 {offsets = [0, 0], sizes = [8, 256], strides = [1, 1]} : vector<8x512xf32> to vector<8x256xf32>
    %16 = arith.truncf %15 : vector<8x256xf32> to vector<8x256xbf16>
    %17 = vector.extract_strided_slice %14 {offsets = [0, 256], sizes = [8, 256], strides = [1, 1]} : vector<8x512xf32> to vector<8x256xf32>
    %18 = arith.truncf %17 : vector<8x256xf32> to vector<8x256xbf16>
    %c0_16 = arith.constant 0 : index
    %c0_17 = arith.constant 0 : index
    %19 = vector.load %arg5[%c0_16, %c0_17] : memref<256x256xbf16, #tpu.memory_space<vmem>>, vector<256x256xbf16>
    %cst_18 = arith.constant dense<0.000000e+00> : vector<8x256xf32>
    %20 = tpu.matmul %16, %19, %cst_18 {dimension_numbers = #tpu.dot_dimension_numbers<[1], [0], [0], [1], [0, 0, 1, 1], [], []>} : vector<8x256xbf16>, vector<256x256xbf16>, vector<8x256xf32> -> vector<8x256xf32>
    %c0_19 = arith.constant 0 : index
    %c0_20 = arith.constant 0 : index
    %21 = vector.load %arg6[%c0_19, %c0_20] : memref<1x256xf32, #tpu.memory_space<vmem>>, vector<1x256xf32>
    %22 = vector.broadcast %21 : vector<1x256xf32> to vector<8x256xf32>
    %23 = arith.addf %20, %22 : vector<8x256xf32>
    %cst_21 = arith.constant 0.000000e+00 : f32
    %24 = vector.broadcast %cst_21 : f32 to vector<8x256xf32>
    %25 = arith.maximumf %23, %24 : vector<8x256xf32>
    %c0_22 = arith.constant 0 : index
    %c0_23 = arith.constant 0 : index
    %26 = vector.load %arg7[%c0_22, %c0_23] : memref<256x256xbf16, #tpu.memory_space<vmem>>, vector<256x256xbf16>
    %cst_24 = arith.constant dense<0.000000e+00> : vector<8x256xf32>
    %27 = tpu.matmul %18, %26, %cst_24 {dimension_numbers = #tpu.dot_dimension_numbers<[1], [0], [0], [1], [0, 0, 1, 1], [], []>} : vector<8x256xbf16>, vector<256x256xbf16>, vector<8x256xf32> -> vector<8x256xf32>
    %c0_25 = arith.constant 0 : index
    %c0_26 = arith.constant 0 : index
    %28 = vector.load %arg8[%c0_25, %c0_26] : memref<1x256xf32, #tpu.memory_space<vmem>>, vector<1x256xf32>
    %29 = vector.broadcast %28 : vector<1x256xf32> to vector<8x256xf32>
    %30 = arith.addf %27, %29 : vector<8x256xf32>
    %cst_27 = arith.constant 0.000000e+00 : f32
    %31 = vector.broadcast %cst_27 : f32 to vector<8x256xf32>
    %32 = arith.maximumf %30, %31 : vector<8x256xf32>
    %c0_28 = arith.constant 0 : index
    %c0_29 = arith.constant 0 : index
    %33 = vector.load %arg9[%c0_28, %c0_29] : memref<1x256xf32, #tpu.memory_space<vmem>>, vector<1x256xf32>
    %34 = vector.broadcast %33 : vector<1x256xf32> to vector<8x256xf32>
    %35 = arith.mulf %25, %34 : vector<8x256xf32>
    %cst_30 = arith.constant dense<0.000000e+00> : vector<8xf32>
    %36 = vector.multi_reduction <add>, %35, %cst_30 [1] : vector<8x256xf32> to vector<8xf32>
    %37 = vector.shape_cast %36 : vector<8xf32> to vector<8x1xf32>
    %c0_31 = arith.constant 0 : index
    %c0_32 = arith.constant 0 : index
    %38 = vector.load %arg10[%c0_31, %c0_32] : memref<1x256xf32, #tpu.memory_space<vmem>>, vector<1x256xf32>
    %39 = vector.broadcast %38 : vector<1x256xf32> to vector<8x256xf32>
    %40 = arith.mulf %32, %39 : vector<8x256xf32>
    %cst_33 = arith.constant dense<0.000000e+00> : vector<8xf32>
    %41 = vector.multi_reduction <add>, %40, %cst_33 [1] : vector<8x256xf32> to vector<8xf32>
    %42 = vector.shape_cast %41 : vector<8xf32> to vector<8x1xf32>
    %c0_34 = arith.constant 0 : index
    %c0_35 = arith.constant 0 : index
    %43 = vector.load %arg11[%c0_34, %c0_35] : memref<1x2xf32, #tpu.memory_space<vmem>>, vector<1x1xf32>
    %44 = vector.broadcast %43 : vector<1x1xf32> to vector<8x1xf32>
    %45 = arith.addf %37, %44 : vector<8x1xf32>
    %c0_36 = arith.constant 0 : index
    %c0_37 = arith.constant 0 : index
    %46 = vector.load %arg12[%c0_36, %c0_37] : memref<8x2xf32, #tpu.memory_space<vmem>>, vector<8x1xf32>
    tpu.vector_store %arg12[%c0_36, %c0_37], %45 {strides = array<i32>} : memref<8x2xf32, #tpu.memory_space<vmem>>, vector<8x1xf32>,
    %c0_38 = arith.constant 0 : index
    %c1 = arith.constant 1 : index
    %47 = vector.load %arg11[%c0_38, %c1] : memref<1x2xf32, #tpu.memory_space<vmem>>, vector<1x1xf32>
    %48 = vector.broadcast %47 : vector<1x1xf32> to vector<8x1xf32>
    %49 = arith.addf %42, %48 : vector<8x1xf32>
    %c0_39 = arith.constant 0 : index
    %c1_40 = arith.constant 1 : index
    %50 = vector.load %arg12[%c0_39, %c1_40] : memref<8x2xf32, #tpu.memory_space<vmem>>, vector<8x1xf32>
    tpu.vector_store %arg12[%c0_39, %c1_40], %49 {strides = array<i32>} : memref<8x2xf32, #tpu.memory_space<vmem>>, vector<8x1xf32>,
    return
  }
  func.func @transform_0(%arg0: i32) -> (i32, i32) {
    %c0_i32 = arith.constant 0 : i32
    %c0_i32_0 = arith.constant 0 : i32
    return %arg0, %c0_i32 : i32, i32
  }
  func.func @transform_1(%arg0: i32) -> (i32, i32) {
    %c0_i32 = arith.constant 0 : i32
    %c0_i32_0 = arith.constant 0 : i32
    return %arg0, %c0_i32 : i32, i32
  }
  func.func @transform_2(%arg0: i32) -> (i32, i32) {
    %c0_i32 = arith.constant 0 : i32
    %c0_i32_0 = arith.constant 0 : i32
    %c0_i32_1 = arith.constant 0 : i32
    return %c0_i32, %c0_i32_0 : i32, i32
  }
  func.func @transform_3(%arg0: i32) -> (i32, i32) {
    %c0_i32 = arith.constant 0 : i32
    %c0_i32_0 = arith.constant 0 : i32
    %c0_i32_1 = arith.constant 0 : i32
    return %c0_i32, %c0_i32_0 : i32, i32
  }
  func.func @transform_4(%arg0: i32) -> (i32, i32) {
    %c0_i32 = arith.constant 0 : i32
    %c0_i32_0 = arith.constant 0 : i32
    %c0_i32_1 = arith.constant 0 : i32
    return %c0_i32, %c0_i32_0 : i32, i32
  }
  func.func @transform_5(%arg0: i32) -> (i32, i32) {
    %c0_i32 = arith.constant 0 : i32
    %c0_i32_0 = arith.constant 0 : i32
    %c0_i32_1 = arith.constant 0 : i32
    return %c0_i32, %c0_i32_0 : i32, i32
  }
  func.func @transform_6(%arg0: i32) -> (i32, i32) {
    %c0_i32 = arith.constant 0 : i32
    %c0_i32_0 = arith.constant 0 : i32
    %c0_i32_1 = arith.constant 0 : i32
    return %c0_i32, %c0_i32_0 : i32, i32
  }
  func.func @transform_7(%arg0: i32) -> (i32, i32) {
    %c0_i32 = arith.constant 0 : i32
    %c0_i32_0 = arith.constant 0 : i32
    %c0_i32_1 = arith.constant 0 : i32
    return %c0_i32, %c0_i32_0 : i32, i32
  }
  func.func @transform_8(%arg0: i32) -> (i32, i32) {
    %c0_i32 = arith.constant 0 : i32
    %c0_i32_0 = arith.constant 0 : i32
    %c0_i32_1 = arith.constant 0 : i32
    return %c0_i32, %c0_i32_0 : i32, i32
  }
  func.func @transform_9(%arg0: i32) -> (i32, i32) {
    %c0_i32 = arith.constant 0 : i32
    %c0_i32_0 = arith.constant 0 : i32
    %c0_i32_1 = arith.constant 0 : i32
    return %c0_i32, %c0_i32_0 : i32, i32
  }
  func.func @transform_10(%arg0: i32) -> (i32, i32) {
    %c0_i32 = arith.constant 0 : i32
    %c0_i32_0 = arith.constant 0 : i32
    %c0_i32_1 = arith.constant 0 : i32
    return %c0_i32, %c0_i32_0 : i32, i32
  }
  func.func @transform_11(%arg0: i32) -> (i32, i32) {
    %c0_i32 = arith.constant 0 : i32
    %c0_i32_0 = arith.constant 0 : i32
    return %arg0, %c0_i32 : i32, i32
  }
}

</mosaic_0001>

<bundles_post_ra>
// kernel: tpu_custom_call.1
= control target key start
LH: loop header
LB: loop body
LE: loop exit
PB: predicated region body
PF: predicated region fallthrough
CT: control target
= control target key end

     0   :  { %16 = vsyncpa [#allocation4], 0  ;;  %s1794_s0 = inlined_call_operand.hbm [shape: f32[8,17], index: 0, kind: input, shape index: {}]   ;;  %s1795_s1 = inlined_call_operand.hbm [shape: f32[8,6], index: 1, kind: input, shape index: {}]   ;;  %s1796_s2 = inlined_call_operand.hbm [shape: bf16[256,512], index: 2, kind: input, shape index: {}]   ;;  %s1797_s3 = inlined_call_operand.vmem [shape: f32[1,512], index: 3, kind: input, shape index: {}]   ;;  %s1798_s4 = inlined_call_operand.hbm [shape: bf16[256,256], index: 4, kind: input, shape index: {}]   ;;  %s1799_s5 = inlined_call_operand.vmem [shape: f32[1,256], index: 5, kind: input, shape index: {}]   ;;  %s1800_s6 = inlined_call_operand.hbm [shape: bf16[256,256], index: 6, kind: input, shape index: {}]   ;;  %s1801_s7 = inlined_call_operand.vmem [shape: f32[1,256], index: 7, kind: input, shape index: {}]   ;;  %s1802_s8 = inlined_call_operand.vmem [shape: f32[1,256], index: 8, kind: input, shape index: {}]   ;;  %s1803_s9 = inlined_call_operand.vmem [shape: f32[1,256], index: 9, kind: input, shape index: {}]   ;;  %s1804_s10 = inlined_call_operand.vmem [shape: f32[1,2], index: 10, kind: input, shape index: {}]   ;;  %s1805_s11 = inlined_call_operand.vmem [shape: f32[8,2], index: 11, kind: output, shape index: {}]  }
   0x1   :  { %17 = vsyncpa [#allocation6], 0 }
   0x2   :  { %18 = vsyncpa [#allocation9], 0  ;;  %s1613_s17 = smov [#allocation5]   ;;  %s1614_s19 = smov [#allocation8]  }
   0x3   :  { %s35_s18 = sshll.u32 %s1613_s17, 4  ;;  %s58_s20 = sshll.u32 %s1614_s19, 4  ;;  %s36_s18 = int_to_ptr.vmem [resolvable:$true] %s35_s18  ;;  %s1683_s20 = int_to_ptr.vmem [resolvable:$true] %s58_s20 }
   0x4   :  { %s1497_s23 = scalar_lea.hbm %s1795_s1, 128 }
   0x5   :  { %p1498_p0 = scmp.ne.s32.totalorder %s1795_s1, %s1497_s23  ;;  %p1501_p1 = scmp.lt.u32.totalorder %s1497_s23, %s1795_s1 }
   0x7   :  { %p1503_p2 = pnand %p1501_p1, %p1498_p0 }
   0x9   :  { %1506 = shalt.err (!%p1503_p2)
}
   0xa   :  { %s1507_s28 = scalar_lea.vmem %s36_s18, 128  ;;  %p1512_p4 = scmp.lt.s32.totalorder %s36_s18, %s36_s18 }
   0xb   :  { %p1508_p3 = scmp.ne.s32.totalorder %s36_s18, %s1507_s28  ;;  %p1513_p5 = scmp.lt.s32.totalorder %s1507_s28, %s1507_s28 }
   0xd   :  { %p1514_p6 = por %p1513_p5, %p1512_p4 }
   0xf   :  { %p1515_p7 = pnand %p1514_p6, %p1508_p3 }
  0x11   :  { %1518 = shalt.err (!%p1515_p7)
}
  0x12   :  { %38 = dma.hbm_to_vmem [thread:$0]  %s1795_s1, 128, %s36_s18, [#allocation6]  }
  0x13   :  { %s1519_s14 = scalar_lea.hbm %s1798_s4, 4096 }
  0x14   :  { %p1520_p8 = scmp.ne.s32.totalorder %s1798_s4, %s1519_s14  ;;  %p1523_p9 = scmp.lt.u32.totalorder %s1519_s14, %s1798_s4 }
  0x16   :  { %p1525_p10 = pnand %p1523_p9, %p1520_p8 }
  0x18   :  { %1528 = shalt.err (!%p1525_p10)
}
  0x19   :  { %s1529_s21 = scalar_lea.vmem %s1683_s20, 4096  ;;  %p1534_p12 = scmp.lt.s32.totalorder %s1683_s20, %s1683_s20 }
  0x1a   :  { %p1530_p11 = scmp.ne.s32.totalorder %s1683_s20, %s1529_s21  ;;  %p1535_p13 = scmp.lt.s32.totalorder %s1529_s21, %s1529_s21 }
  0x1c   :  { %p1536_p0 = por %p1535_p13, %p1534_p12 }
  0x1e   :  { %p1537_p1 = pnand %p1536_p0, %p1530_p11 }
  0x20   :  { %1540 = shalt.err (!%p1537_p1)
}
  0x21   :  { %s1615_s1 = smov 128   ;;  %s1616_s18 = smov 8  }
  0x22   :  { %64 = dma.hbm_to_vmem [thread:$0]  %s1798_s4, 4096, %s1683_s20, [#allocation9], %s1615_s1, %s1615_s1, %s1616_s18  }
  0x23   :  { %s1617_s24 = smov [#allocation3]   ;;  %s1618_s26 = smov [#allocation7]  }
  0x24   :  { %s25_s25 = sshll.u32 %s1617_s24, 4  ;;  %s44_s27 = sshll.u32 %s1618_s26, 4  ;;  %s26_s25 = int_to_ptr.vmem [resolvable:$true] %s25_s25  ;;  %s1717_s27 = int_to_ptr.vmem [resolvable:$true] %s44_s27 }
  0x25   :  { %s1541_s30 = scalar_lea.hbm %s1794_s0, 128 }
  0x26   :  { %p1542_p2 = scmp.ne.s32.totalorder %s1794_s0, %s1541_s30  ;;  %p1545_p3 = scmp.lt.u32.totalorder %s1541_s30, %s1794_s0 }
  0x28   :  { %p1547_p4 = pnand %p1545_p3, %p1542_p2 }
  0x2a   :  { %1550 = shalt.err (!%p1547_p4)
}
  0x2b   :  { %s1551_s4 = scalar_lea.vmem %s26_s25, 128  ;;  %p1556_p6 = scmp.lt.s32.totalorder %s26_s25, %s26_s25 }
  0x2c   :  { %p1552_p5 = scmp.ne.s32.totalorder %s26_s25, %s1551_s4  ;;  %p1557_p7 = scmp.lt.s32.totalorder %s1551_s4, %s1551_s4 }
  0x2e   :  { %p1558_p8 = por %p1557_p7, %p1556_p6 }
  0x30   :  { %p1559_p9 = pnand %p1558_p8, %p1552_p5 }
  0x32   :  { %1562 = shalt.err (!%p1559_p9)
}
  0x33   :  { %28 = dma.hbm_to_vmem [thread:$0]  %s1794_s0, 128, %s26_s25, [#allocation4]  }
  0x34   :  { %s1563_s21 = scalar_lea.hbm %s1796_s2, 8192 }
  0x35   :  { %p1564_p10 = scmp.ne.s32.totalorder %s1796_s2, %s1563_s21  ;;  %p1567_p11 = scmp.lt.u32.totalorder %s1563_s21, %s1796_s2 }
  0x37   :  { %p1569_p12 = pnand %p1567_p11, %p1564_p10 }
  0x39   :  { %1572 = shalt.err (!%p1569_p12)
}
  0x3a   :  { %s1573_s28 = scalar_lea.vmem %s1717_s27, 8192  ;;  %p1578_p0 = scmp.lt.s32.totalorder %s1717_s27, %s1717_s27 }
  0x3b   :  { %p1574_p13 = scmp.ne.s32.totalorder %s1717_s27, %s1573_s28  ;;  %p1579_p1 = scmp.lt.s32.totalorder %s1573_s28, %s1573_s28 }
  0x3d   :  { %p1580_p2 = por %p1579_p1, %p1578_p0 }
  0x3f   :  { %p1581_p3 = pnand %p1580_p2, %p1574_p13 }
  0x41   :  { %1584 = shalt.err (!%p1581_p3)
}
  0x42   :  { %s1619_s0 = smov 256   ;;  %s1620_s25 = smov 16  }
  0x43   :  { %50 = dma.hbm_to_vmem [thread:$0]  %s1796_s2, 8192, %s1717_s27, [#allocation6], %s1619_s0, %s1619_s0, %s1620_s25  }
  0x44   :  { %s1621_s12 = smov [#allocation10]   ;;  %s1585_s4 = scalar_lea.hbm %s1800_s6, 4096 }
  0x45   :  { %s72_s13 = sshll.u32 %s1621_s12, 4  ;;  %p1586_p4 = scmp.ne.s32.totalorder %s1800_s6, %s1585_s4  ;;  %s73_s13 = int_to_ptr.vmem [resolvable:$true] %s72_s13 }
  0x46   :  { %p1589_p5 = scmp.lt.u32.totalorder %s1585_s4, %s1800_s6 }
  0x48   :  { %p1591_p6 = pnand %p1589_p5, %p1586_p4 }
  0x4a   :  { %1594 = shalt.err (!%p1591_p6)
}
  0x4b   :  { %s1595_s21 = scalar_lea.vmem %s73_s13, 4096  ;;  %p1600_p8 = scmp.lt.s32.totalorder %s73_s13, %s73_s13 }
  0x4c   :  { %p1596_p7 = scmp.ne.s32.totalorder %s73_s13, %s1595_s21  ;;  %p1601_p9 = scmp.lt.s32.totalorder %s1595_s21, %s1595_s21 }
  0x4e   :  { %p1602_p10 = por %p1601_p9, %p1600_p8 }
  0x50   :  { %p1603_p11 = pnand %p1602_p10, %p1596_p7 }
  0x52   :  { %1606 = shalt.err (!%p1603_p11)
}
  0x53   :  { %78 = dma.hbm_to_vmem [thread:$0]  %s1800_s6, 4096, %s73_s13, [#allocation9], %s1615_s1, %s1615_s1, %s1616_s18  }
  0x54   :  { %1607 = dma.done.wait [#allocation4], 128  }
  0x55   :  { %1608 = vsyncadd [#allocation4], 4294967168 }
  0x56   :  { %1609 = dma.done.wait [#allocation6], 8320  }
  0x57   :  { %1610 = vsyncadd [#allocation6], 4294958976 }
  0x58   :  { %1611 = dma.done.wait [#allocation9], 8192  }
  0x59   :  { %1612 = vsyncadd [#allocation9], 4294959104  ;;  %v1622_v0 = vmov 0.0   ;;  %v1305_v1 = vld [vmem:[#allocation7 + $0x4] ss:$16 sps:$4 sm:$0xff]   ;;  %vm108_vm0 = vcmask 48128  }
  0x5a   :  { %102 = vst [vmem:[#allocation2] sm:$0xff] %v1622_v0  ;;  %103 = vst [vmem:[#allocation2 + $0x8] sm:$0xff] %v1622_v0  ;;  %v1307_v2 = vld [vmem:[#allocation7 + $0xc] ss:$16 sps:$4 sm:$0xff]   ;;  %520 = vmatprep.subr.bf16.mxu0 %v1305_v1  ;;  %v1309_v3 = vld [vmem:[#allocation7] ss:$16 sps:$4 sm:$0xff]  }
  0x5b   :  { %v1310_v4 = vld [vmem:[#allocation7 + $0x8] ss:$16 sps:$4 sm:$0xff]   ;;  %561 = vmatprep.subr.bf16.mxu1 %v1307_v2  ;;  %v1311_v5 = vld [vmem:[#allocation7 + $0x24] ss:$16 sps:$4 sm:$0xff]   ;;  %521 = vmatpush1.bf16.msra.mxu0 %v1309_v3  ;;  %v1313_v6 = vld [vmem:[#allocation7 + $0x2c] ss:$16 sps:$4 sm:$0xff]  }
  0x5c   :  { %562 = vmatpush1.bf16.msra.mxu1 %v1310_v4  ;;  %v1315_v7 = vld [vmem:[#allocation7 + $0x20] ss:$16 sps:$4 sm:$0xff]   ;;  %522 = vmatprep.subr.bf16.mxu0 %v1311_v5  ;;  %v1316_v8 = vld [vmem:[#allocation7 + $0x28] ss:$16 sps:$4 sm:$0xff]   ;;  %v1317_v9 = vld [vmem:[#allocation7 + $0x44] ss:$16 sps:$4 sm:$0xff]  }
  0x5d   :  { %563 = vmatprep.subr.bf16.mxu1 %v1313_v6  ;;  %v1319_v10 = vld [vmem:[#allocation7 + $0x4c] ss:$16 sps:$4 sm:$0xff]   ;;  %v1321_v11 = vld [vmem:[#allocation7 + $0x40] ss:$16 sps:$4 sm:$0xff]   ;;  %v1322_v12 = vld [vmem:[#allocation7 + $0x48] ss:$16 sps:$4 sm:$0xff]  }
  0x5e   :  { %v1323_v13 = vld [vmem:[#allocation7 + $0x64] ss:$16 sps:$4 sm:$0xff]   ;;  %v1325_v14 = vld [vmem:[#allocation7 + $0x6c] ss:$16 sps:$4 sm:$0xff]   ;;  %v1327_v15 = vld [vmem:[#allocation7 + $0x60] ss:$16 sps:$4 sm:$0xff]  }
  0x5f   :  { %523 = vmatpush1.bf16.msra.mxu0 %v1315_v7  ;;  %v1328_v16 = vld [vmem:[#allocation7 + $0x68] ss:$16 sps:$4 sm:$0xff]   ;;  %v1329_v17 = vld [vmem:[#allocation7 + $0x84] ss:$16 sps:$4 sm:$0xff]   ;;  %v1331_v18 = vld [vmem:[#allocation7 + $0x8c] ss:$16 sps:$4 sm:$0xff]  }
  0x60   :  { %564 = vmatpush1.bf16.msra.mxu1 %v1316_v8  ;;  %524 = vmatprep.subr.bf16.mxu0 %v1317_v9  ;;  %v1333_v19 = vld [vmem:[#allocation7 + $0x80] ss:$16 sps:$4 sm:$0xff]   ;;  %v1334_v20 = vld [vmem:[#allocation7 + $0x88] ss:$16 sps:$4 sm:$0xff]   ;;  %v1335_v21 = vld [vmem:[#allocation7 + $0xa4] ss:$16 sps:$4 sm:$0xff]  }
  0x61   :  { %565 = vmatprep.subr.bf16.mxu1 %v1319_v10  ;;  %v1337_v22 = vld [vmem:[#allocation7 + $0xac] ss:$16 sps:$4 sm:$0xff]   ;;  %v1339_v23 = vld [vmem:[#allocation7 + $0xa0] ss:$16 sps:$4 sm:$0xff]   ;;  %v1340_v24 = vld [vmem:[#allocation7 + $0xa8] ss:$16 sps:$4 sm:$0xff]  }
  0x62   :  { %v1341_v25 = vld [vmem:[#allocation7 + $0xc4] ss:$16 sps:$4 sm:$0xff]   ;;  %v1343_v26 = vld [vmem:[#allocation7 + $0xcc] ss:$16 sps:$4 sm:$0xff]   ;;  %v1345_v27 = vld [vmem:[#allocation7 + $0xc0] ss:$16 sps:$4 sm:$0xff]  }
  0x63   :  { %525 = vmatpush1.bf16.msra.mxu0 %v1321_v11  ;;  %v1346_v28 = vld [vmem:[#allocation7 + $0xc8] ss:$16 sps:$4 sm:$0xff]   ;;  %v1347_v29 = vld [vmem:[#allocation7 + $0xe4] ss:$16 sps:$4 sm:$0xff]   ;;  %v1349_v30 = vld [vmem:[#allocation7 + $0xec] ss:$16 sps:$4 sm:$0xff]  }
  0x64   :  { %566 = vmatpush1.bf16.msra.mxu1 %v1322_v12  ;;  %526 = vmatprep.subr.bf16.mxu0 %v1323_v13  ;;  %v1351_v31 = vld [vmem:[#allocation7 + $0xe0] ss:$16 sps:$4 sm:$0xff]   ;;  %v1352_v32 = vld [vmem:[#allocation7 + $0xe8] ss:$16 sps:$4 sm:$0xff]   ;;  %v1353_v33 = vld [vmem:[#allocation7 + $0x104] ss:$16 sps:$4 sm:$0xff]  }
  0x65   :  { %567 = vmatprep.subr.bf16.mxu1 %v1325_v14  ;;  %v1355_v34 = vld [vmem:[#allocation7 + $0x10c] ss:$16 sps:$4 sm:$0xff]   ;;  %v1357_v35 = vld [vmem:[#allocation7 + $0x100] ss:$16 sps:$4 sm:$0xff]   ;;  %v1358_v36 = vld [vmem:[#allocation7 + $0x108] ss:$16 sps:$4 sm:$0xff]  }
  0x66   :  { %v1359_v37 = vld [vmem:[#allocation7 + $0x124] ss:$16 sps:$4 sm:$0xff]   ;;  %v1361_v38 = vld [vmem:[#allocation7 + $0x12c] ss:$16 sps:$4 sm:$0xff]   ;;  %v1363_v39 = vld [vmem:[#allocation7 + $0x120] ss:$16 sps:$4 sm:$0xff]  }
  0x67   :  { %527 = vmatpush1.bf16.msra.mxu0 %v1327_v15  ;;  %v1364_v40 = vld [vmem:[#allocation7 + $0x128] ss:$16 sps:$4 sm:$0xff]   ;;  %v1365_v41 = vld [vmem:[#allocation7 + $0x144] ss:$16 sps:$4 sm:$0xff]   ;;  %v1367_v42 = vld [vmem:[#allocation7 + $0x14c] ss:$16 sps:$4 sm:$0xff]  }
  0x68   :  { %568 = vmatpush1.bf16.msra.mxu1 %v1328_v16  ;;  %528 = vmatprep.subr.bf16.mxu0 %v1329_v17  ;;  %v1369_v43 = vld [vmem:[#allocation7 + $0x140] ss:$16 sps:$4 sm:$0xff]   ;;  %v1370_v44 = vld [vmem:[#allocation7 + $0x148] ss:$16 sps:$4 sm:$0xff]   ;;  %v1371_v45 = vld [vmem:[#allocation7 + $0x164] ss:$16 sps:$4 sm:$0xff]  }
  0x69   :  { %569 = vmatprep.subr.bf16.mxu1 %v1331_v18  ;;  %v1373_v46 = vld [vmem:[#allocation7 + $0x16c] ss:$16 sps:$4 sm:$0xff]   ;;  %vm105_vm1 = vcmask 138240   ;;  %v104_v48 = vld [vmem:[#allocation3] sm:$0xff]  ;;  %v1376_v50 = vld [vmem:[#allocation7 + $0x168] ss:$16 sps:$4 sm:$0xff]  }
  0x6a   :  { %v107_v47 = vld [vmem:[#allocation5] sm:$0xff]  ;;  %v1375_v49 = vld [vmem:[#allocation7 + $0x160] ss:$16 sps:$4 sm:$0xff]   ;;  %106 = vst.msk [vmem:[#allocation2] sm:$0xff] %vm105_vm1, %v104_v48  ;;  %v1377_v51 = vld [vmem:[#allocation7 + $0x184] ss:$16 sps:$4 sm:$0xff]  }
  0x6b   :  { %529 = vmatpush1.bf16.msra.mxu0 %v1333_v19  ;;  %109 = vst.msk [vmem:[#allocation2 + $0x8] sm:$0xff] %vm108_vm0, %v107_v47  ;;  %v1379_v52 = vld [vmem:[#allocation7 + $0x18c] ss:$16 sps:$4 sm:$0xff]   ;;  %v1381_v53 = vld [vmem:[#allocation7 + $0x180] ss:$16 sps:$4 sm:$0xff]   ;;  %vm1146_vm2 = vcmask 7168  }
  0x6c   :  { %570 = vmatpush1.bf16.msra.mxu1 %v1334_v20  ;;  %530 = vmatprep.subr.bf16.mxu0 %v1335_v21  ;;  %v1382_v54 = vld [vmem:[#allocation7 + $0x188] ss:$16 sps:$4 sm:$0xff]   ;;  %v1383_v55 = vld [vmem:[#allocation7 + $0x1a4] ss:$16 sps:$4 sm:$0xff]   ;;  %v1385_v56 = vld [vmem:[#allocation7 + $0x1ac] ss:$16 sps:$4 sm:$0xff]  }
  0x6d   :  { %571 = vmatprep.subr.bf16.mxu1 %v1337_v22  ;;  %v1387_v58 = vld [vmem:[#allocation7 + $0x1a0] ss:$16 sps:$4 sm:$0xff]   ;;  %v1388_v59 = vld [vmem:[#allocation7 + $0x1a8] ss:$16 sps:$4 sm:$0xff]   ;;  %v1389_v61 = vld [vmem:[#allocation7 + $0x1c4] ss:$16 sps:$4 sm:$0xff]  }
  0x6e   :  { %v1391_v62 = vld [vmem:[#allocation7 + $0x1cc] ss:$16 sps:$4 sm:$0xff]   ;;  %v1393_v63 = vld [vmem:[#allocation7 + $0x1c0] ss:$16 sps:$4 sm:$0xff]   ;;  %v1394_v0 = vld [vmem:[#allocation7 + $0x1c8] ss:$16 sps:$4 sm:$0xff]  }
  0x6f   :  { %531 = vmatpush1.bf16.msra.mxu0 %v1339_v23  ;;  %v1395_v1 = vld [vmem:[#allocation7 + $0x1e4] ss:$16 sps:$4 sm:$0xff]   ;;  %v1397_v2 = vld [vmem:[#allocation7 + $0x1ec] ss:$16 sps:$4 sm:$0xff]   ;;  %v1399_v3 = vld [vmem:[#allocation7 + $0x1e0] ss:$16 sps:$4 sm:$0xff]  }
  0x70   :  { %572 = vmatpush1.bf16.msra.mxu1 %v1340_v24  ;;  %532 = vmatprep.subr.bf16.mxu0 %v1341_v25  ;;  %v1400_v4 = vld [vmem:[#allocation7 + $0x1e8] ss:$16 sps:$4 sm:$0xff]   ;;  %v1403_v5 = vld [vmem:[#allocation8 + $0x4] ss:$8 sps:$4 sm:$0xff]   ;;  %v1409_v11 = vld [vmem:[#allocation8 + $0x14] ss:$8 sps:$4 sm:$0xff]  }
  0x71   :  { %573 = vmatprep.subr.bf16.mxu1 %v1343_v26  ;;  %v110_v6 = vld [vmem:[#allocation2] sm:$0xff]  ;;  %v1412_v12 = vld [vmem:[#allocation10 + $0x14] ss:$8 sps:$4 sm:$0xff]   ;;  %v1407_v13 = vld [vmem:[#allocation8 + $0x10] ss:$8 sps:$4 sm:$0xff]   ;;  %vm1156_vm3 = vcmask 15368  }
  0x72   :  { %v111_v57 = vld [vmem:[#allocation2 + $0x8] sm:$0xff]  ;;  %v112_v8 = vpack.c.bf16 %v110_v6, %v110_v6  ;;  %v1410_v14 = vld [vmem:[#allocation10 + $0x10] ss:$8 sps:$4 sm:$0xff]   ;;  %v1421_v19 = vld [vmem:[#allocation8 + $0x34] ss:$8 sps:$4 sm:$0xff]  }
  0x73   :  { %533 = vmatpush1.bf16.msra.mxu0 %v1345_v27  ;;  %v113_v60 = vpack.c.bf16 %v111_v57, %v111_v57  ;;  %v1406_v7 = vld [vmem:[#allocation10 + $0x4] ss:$8 sps:$4 sm:$0xff]   ;;  %v1401_v9 = vld [vmem:[#allocation8] ss:$8 sps:$4 sm:$0xff]   ;;  %v1424_v20 = vld [vmem:[#allocation10 + $0x34] ss:$8 sps:$4 sm:$0xff]  }
  0x74   :  { %574 = vmatpush1.bf16.msra.mxu1 %v1346_v28  ;;  %534 = vmatprep.subr.bf16.mxu0 %v1347_v29  ;;  %v1404_v10 = vld [vmem:[#allocation10] ss:$8 sps:$4 sm:$0xff]   ;;  %v1415_v15 = vld [vmem:[#allocation8 + $0x24] ss:$8 sps:$4 sm:$0xff]   ;;  %v1419_v21 = vld [vmem:[#allocation8 + $0x30] ss:$8 sps:$4 sm:$0xff]  }
  0x75   :  { %575 = vmatprep.subr.bf16.mxu1 %v1349_v30  ;;  %552 = vmatprep.mubr.bf16.mxu0 %v113_v60  ;;  %v1418_v16 = vld [vmem:[#allocation10 + $0x24] ss:$8 sps:$4 sm:$0xff]   ;;  %v1413_v17 = vld [vmem:[#allocation8 + $0x20] ss:$8 sps:$4 sm:$0xff]   ;;  %v1422_v22 = vld [vmem:[#allocation10 + $0x30] ss:$8 sps:$4 sm:$0xff]  }
  0x76   :  { %593 = vmatprep.mubr.bf16.mxu1 %v113_v60  ;;  %v1416_v18 = vld [vmem:[#allocation10 + $0x20] ss:$8 sps:$4 sm:$0xff]   ;;  %v1427_v23 = vld [vmem:[#allocation8 + $0x44] ss:$8 sps:$4 sm:$0xff]   ;;  %v1433_v27 = vld [vmem:[#allocation8 + $0x54] ss:$8 sps:$4 sm:$0xff]  }
  0x77   :  { %535 = vmatpush1.bf16.msra.mxu0 %v1351_v31  ;;  %v1430_v24 = vld [vmem:[#allocation10 + $0x44] ss:$8 sps:$4 sm:$0xff]   ;;  %v1425_v25 = vld [vmem:[#allocation8 + $0x40] ss:$8 sps:$4 sm:$0xff]   ;;  %v1436_v28 = vld [vmem:[#allocation10 + $0x54] ss:$8 sps:$4 sm:$0xff]  }
  0x78   :  { %576 = vmatpush1.bf16.msra.mxu1 %v1352_v32  ;;  %536 = vmatprep.subr.bf16.mxu0 %v1353_v33  ;;  %v1428_v26 = vld [vmem:[#allocation10 + $0x40] ss:$8 sps:$4 sm:$0xff]   ;;  %v1431_v29 = vld [vmem:[#allocation8 + $0x50] ss:$8 sps:$4 sm:$0xff]   ;;  %v1439_v31 = vld [vmem:[#allocation8 + $0x64] ss:$8 sps:$4 sm:$0xff]  }
  0x79   :  { %577 = vmatprep.subr.bf16.mxu1 %v1355_v34  ;;  %v1434_v30 = vld [vmem:[#allocation10 + $0x50] ss:$8 sps:$4 sm:$0xff]   ;;  %v1442_v32 = vld [vmem:[#allocation10 + $0x64] ss:$8 sps:$4 sm:$0xff]   ;;  %v1437_v33 = vld [vmem:[#allocation8 + $0x60] ss:$8 sps:$4 sm:$0xff]  }
  0x7a   :  { %v1440_v34 = vld [vmem:[#allocation10 + $0x60] ss:$8 sps:$4 sm:$0xff]   ;;  %v1463_v47 = vld [vmem:[#allocation8 + $0xa4] ss:$8 sps:$4 sm:$0xff]   ;;  %v1484_v60 = vld [vmem:[#allocation10 + $0xd4] ss:$8 sps:$4 sm:$0xff]  }
  0x7b   :  { %537 = vmatpush1.bf16.msra.mxu0 %v1357_v35  ;;  %v1445_v35 = vld [vmem:[#allocation8 + $0x74] ss:$8 sps:$4 sm:$0xff]   ;;  %v1466_v48 = vld [vmem:[#allocation10 + $0xa4] ss:$8 sps:$4 sm:$0xff]   ;;  %v1473_v57 = vld [vmem:[#allocation8 + $0xc0] ss:$8 sps:$4 sm:$0xff]  }
  0x7c   :  { %578 = vmatpush1.bf16.msra.mxu1 %v1358_v36  ;;  %538 = vmatprep.subr.bf16.mxu0 %v1359_v37  ;;  %v1448_v36 = vld [vmem:[#allocation10 + $0x74] ss:$8 sps:$4 sm:$0xff]   ;;  %v1443_v37 = vld [vmem:[#allocation8 + $0x70] ss:$8 sps:$4 sm:$0xff]  }
  0x7d   :  { %579 = vmatprep.subr.bf16.mxu1 %v1361_v38  ;;  %v1446_v38 = vld [vmem:[#allocation10 + $0x70] ss:$8 sps:$4 sm:$0xff]  }
  0x7e   :  { %v1494_v6 = vld [vmem:[#allocation10 + $0xf0] ss:$8 sps:$4 sm:$0xff]  }
  0x7f   :  { %539 = vmatpush1.bf16.msra.mxu0 %v1363_v39  ;;  %v1451_v39 = vld [vmem:[#allocation8 + $0x84] ss:$8 sps:$4 sm:$0xff]  }
  0x80   :  { %580 = vmatpush1.bf16.msra.mxu1 %v1364_v40  ;;  %540 = vmatprep.subr.bf16.mxu0 %v1365_v41  ;;  %v1454_v40 = vld [vmem:[#allocation10 + $0x84] ss:$8 sps:$4 sm:$0xff]   ;;  %v1449_v41 = vld [vmem:[#allocation8 + $0x80] ss:$8 sps:$4 sm:$0xff]  }
  0x81   :  { %581 = vmatprep.subr.bf16.mxu1 %v1367_v42  ;;  %v1452_v42 = vld [vmem:[#allocation10 + $0x80] ss:$8 sps:$4 sm:$0xff]  }
  0x83   :  { %541 = vmatpush1.bf16.msra.mxu0 %v1369_v43  ;;  %v1457_v43 = vld [vmem:[#allocation8 + $0x94] ss:$8 sps:$4 sm:$0xff]  }
  0x84   :  { %582 = vmatpush1.bf16.msra.mxu1 %v1370_v44  ;;  %542 = vmatprep.subr.bf16.mxu0 %v1371_v45  ;;  %v1460_v44 = vld [vmem:[#allocation10 + $0x94] ss:$8 sps:$4 sm:$0xff]   ;;  %v1455_v45 = vld [vmem:[#allocation8 + $0x90] ss:$8 sps:$4 sm:$0xff]  }
  0x85   :  { %583 = vmatprep.subr.bf16.mxu1 %v1373_v46  ;;  %v1458_v46 = vld [vmem:[#allocation10 + $0x90] ss:$8 sps:$4 sm:$0xff]  }
  0x87   :  { %543 = vmatpush1.bf16.msra.mxu0 %v1375_v49  ;;  %v1461_v49 = vld [vmem:[#allocation8 + $0xa0] ss:$8 sps:$4 sm:$0xff]  }
  0x88   :  { %584 = vmatpush1.bf16.msra.mxu1 %v1376_v50  ;;  %544 = vmatprep.subr.bf16.mxu0 %v1377_v51  ;;  %v1464_v50 = vld [vmem:[#allocation10 + $0xa0] ss:$8 sps:$4 sm:$0xff]   ;;  %v1469_v51 = vld [vmem:[#allocation8 + $0xb4] ss:$8 sps:$4 sm:$0xff]  }
  0x89   :  { %585 = vmatprep.subr.bf16.mxu1 %v1379_v52  ;;  %v1472_v52 = vld [vmem:[#allocation10 + $0xb4] ss:$8 sps:$4 sm:$0xff]  }
  0x8b   :  { %545 = vmatpush1.bf16.msra.mxu0 %v1381_v53  ;;  %v1467_v53 = vld [vmem:[#allocation8 + $0xb0] ss:$8 sps:$4 sm:$0xff]  }
  0x8c   :  { %586 = vmatpush1.bf16.msra.mxu1 %v1382_v54  ;;  %546 = vmatprep.subr.bf16.mxu0 %v1383_v55  ;;  %v1470_v54 = vld [vmem:[#allocation10 + $0xb0] ss:$8 sps:$4 sm:$0xff]   ;;  %v1475_v55 = vld [vmem:[#allocation8 + $0xc4] ss:$8 sps:$4 sm:$0xff]  }
  0x8d   :  { %587 = vmatprep.subr.bf16.mxu1 %v1385_v56  ;;  %v1478_v56 = vld [vmem:[#allocation10 + $0xc4] ss:$8 sps:$4 sm:$0xff]  }
  0x8f   :  { %547 = vmatpush1.bf16.msra.mxu0 %v1387_v58  ;;  %v1476_v58 = vld [vmem:[#allocation10 + $0xc0] ss:$8 sps:$4 sm:$0xff]  }
  0x90   :  { %588 = vmatpush1.bf16.msra.mxu1 %v1388_v59  ;;  %548 = vmatprep.subr.bf16.mxu0 %v1389_v61  ;;  %v1481_v59 = vld [vmem:[#allocation8 + $0xd4] ss:$8 sps:$4 sm:$0xff]   ;;  %v1479_v61 = vld [vmem:[#allocation8 + $0xd0] ss:$8 sps:$4 sm:$0xff]  }
  0x91   :  { %589 = vmatprep.subr.bf16.mxu1 %v1391_v62  ;;  %v1482_v62 = vld [vmem:[#allocation10 + $0xd0] ss:$8 sps:$4 sm:$0xff]  }
  0x93   :  { %549 = vmatpush1.bf16.msra.mxu0 %v1393_v63  ;;  %v1487_v63 = vld [vmem:[#allocation8 + $0xe4] ss:$8 sps:$4 sm:$0xff]  }
  0x94   :  { %590 = vmatpush1.bf16.msra.mxu1 %v1394_v0  ;;  %550 = vmatprep.subr.bf16.mxu0 %v1395_v1  ;;  %v1490_v0 = vld [vmem:[#allocation10 + $0xe4] ss:$8 sps:$4 sm:$0xff]   ;;  %v1485_v1 = vld [vmem:[#allocation8 + $0xe0] ss:$8 sps:$4 sm:$0xff]  }
  0x95   :  { %591 = vmatprep.subr.bf16.mxu1 %v1397_v2  ;;  %v1488_v2 = vld [vmem:[#allocation10 + $0xe0] ss:$8 sps:$4 sm:$0xff]  }
  0x97   :  { %551 = vmatpush1.bf16.msra.mxu0 %v1399_v3  ;;  %v1493_v3 = vld [vmem:[#allocation8 + $0xf4] ss:$8 sps:$4 sm:$0xff]  }
  0x98   :  { %592 = vmatpush1.bf16.msra.mxu1 %v1400_v4  ;;  %814 = vmatprep.subr.bf16.mxu0 %v1403_v5  ;;  %v1496_v4 = vld [vmem:[#allocation10 + $0xf4] ss:$8 sps:$4 sm:$0xff]   ;;  %v1491_v5 = vld [vmem:[#allocation8 + $0xf0] ss:$8 sps:$4 sm:$0xff]  }
  0x99   :  { %1061 = vmatprep.subr.bf16.mxu1 %v1406_v7  ;;  %v180_v7 = vlaneseq }
  0x9a   :  { %553 = vmatmul.mubr.bf16.vlgmr.msra.gmra.mrb[0].mxu0 %v112_v8 }
  0x9b   :  { %594 = vmatmul.mubr.bf16.vlgmr.msra.gmra.mrb[0].mxu1 %v112_v8  ;;  %815 = vmatpush1.bf16.msra.mxu0 %v1401_v9  ;;  %v181_v8 = vshrl.u32 %v180_v7, 7 }
  0x9c   :  { %1062 = vmatpush1.bf16.msra.mxu1 %v1404_v10  ;;  %816 = vmatprep.subr.bf16.mxu0 %v1409_v11  ;;  %v178_v11 = vld [vmem:[%s1797_s3] sm:$0xf] }
  0x9d   :  { %1063 = vmatprep.subr.bf16.mxu1 %v1412_v12  ;;  %v1763_v9 = vsub.s32 0, %v181_v8  ;;  %v190_v10 = vsub.s32 2, %v181_v8  ;;  %v186_v12 = vsub.s32 1, %v181_v8 }
  0x9f   :  { %817 = vmatpush1.bf16.msra.mxu0 %v1407_v13  ;;  %v194_v13 = vsub.s32 3, %v181_v8  ;;  %v1293_v8 = vld [vmem:[%s1804_s10] ss:$0 sm:$0xff] }
  0xa0   :  { %1064 = vmatpush1.bf16.msra.mxu1 %v1410_v14  ;;  %818 = vmatprep.subr.bf16.mxu0 %v1415_v15  ;;  %v183_v14 = vrot.slane %v178_v11, %v1763_v9  ;;  %v191_v15 = vrot.slane %v178_v11, %v190_v10 }
  0xa1   :  { %1065 = vmatprep.subr.bf16.mxu1 %v1418_v16  ;;  %v187_v16 = vrot.slane %v178_v11, %v186_v12 }
  0xa3   :  { %819 = vmatpush1.bf16.msra.mxu0 %v1413_v17  ;;  %v195_v17 = vrot.slane %v178_v11, %v194_v13 }
  0xa4   :  { %1066 = vmatpush1.bf16.msra.mxu1 %v1416_v18  ;;  %820 = vmatprep.subr.bf16.mxu0 %v1421_v19 }
  0xa5   :  { %1067 = vmatprep.subr.bf16.mxu1 %v1424_v20 }
  0xa7   :  { %821 = vmatpush1.bf16.msra.mxu0 %v1419_v21 }
  0xa8   :  { %1068 = vmatpush1.bf16.msra.mxu1 %v1422_v22  ;;  %822 = vmatprep.subr.bf16.mxu0 %v1427_v23 }
  0xa9   :  { %1069 = vmatprep.subr.bf16.mxu1 %v1430_v24 }
  0xab   :  { %823 = vmatpush1.bf16.msra.mxu0 %v1425_v25 }
  0xac   :  { %1070 = vmatpush1.bf16.msra.mxu1 %v1428_v26  ;;  %824 = vmatprep.subr.bf16.mxu0 %v1433_v27 }
  0xad   :  { %1071 = vmatprep.subr.bf16.mxu1 %v1436_v28 }
  0xaf   :  { %825 = vmatpush1.bf16.msra.mxu0 %v1431_v29 }
  0xb0   :  { %1072 = vmatpush1.bf16.msra.mxu1 %v1434_v30  ;;  %826 = vmatprep.subr.bf16.mxu0 %v1439_v31 }
  0xb1   :  { %1073 = vmatprep.subr.bf16.mxu1 %v1442_v32 }
  0xb3   :  { %827 = vmatpush1.bf16.msra.mxu0 %v1437_v33 }
  0xb4   :  { %1074 = vmatpush1.bf16.msra.mxu1 %v1440_v34  ;;  %828 = vmatprep.subr.bf16.mxu0 %v1445_v35 }
  0xb5   :  { %1075 = vmatprep.subr.bf16.mxu1 %v1448_v36 }
  0xb7   :  { %829 = vmatpush1.bf16.msra.mxu0 %v1443_v37 }
  0xb8   :  { %1076 = vmatpush1.bf16.msra.mxu1 %v1446_v38  ;;  %830 = vmatprep.subr.bf16.mxu0 %v1451_v39  ;;  %v642_v38 = vld [vmem:[%s1799_s5] sm:$0x3] }
  0xb9   :  { %1077 = vmatprep.subr.bf16.mxu1 %v1454_v40  ;;  %v889_v39 = vld [vmem:[%s1801_s7] sm:$0x3]  ;;  %v647_v40 = vrot.slane %v642_v38, %v1763_v9 }
  0xbb   :  { %831 = vmatpush1.bf16.msra.mxu0 %v1449_v41  ;;  %v894_v41 = vrot.slane %v889_v39, %v1763_v9 }
  0xbc   :  { %1078 = vmatpush1.bf16.msra.mxu1 %v1452_v42  ;;  %832 = vmatprep.subr.bf16.mxu0 %v1457_v43  ;;  %v1121_v42 = vld [vmem:[%s1803_s9] sm:$0x3]  ;;  %v651_v43 = vrot.slane %v642_v38, %v186_v12 }
  0xbd   :  { %1079 = vmatprep.subr.bf16.mxu1 %v1460_v44  ;;  %v898_v44 = vrot.slane %v889_v39, %v186_v12 }
  0xbf   :  { %833 = vmatpush1.bf16.msra.mxu0 %v1455_v45  ;;  %v1104_v45 = vld [vmem:[%s1802_s8] sm:$0x3] }
  0xc0   :  { %1080 = vmatpush1.bf16.msra.mxu1 %v1458_v46  ;;  %834 = vmatprep.subr.bf16.mxu0 %v1463_v47 }
  0xc1   :  { %1081 = vmatprep.subr.bf16.mxu1 %v1466_v48 }
  0xc3   :  { %835 = vmatpush1.bf16.msra.mxu0 %v1461_v49 }
  0xc4   :  { %1082 = vmatpush1.bf16.msra.mxu1 %v1464_v50  ;;  %836 = vmatprep.subr.bf16.mxu0 %v1469_v51  ;;  %v1126_v50 = vrot.slane %v1121_v42, %v1763_v9 }
  0xc5   :  { %1083 = vmatprep.subr.bf16.mxu1 %v1472_v52 }
  0xc7   :  { %837 = vmatpush1.bf16.msra.mxu0 %v1467_v53  ;;  %v1109_v53 = vrot.slane %v1104_v45, %v1763_v9 }
  0xc8   :  { %1084 = vmatpush1.bf16.msra.mxu1 %v1470_v54  ;;  %838 = vmatprep.subr.bf16.mxu0 %v1475_v55 }
  0xc9   :  { %1085 = vmatprep.subr.bf16.mxu1 %v1478_v56  ;;  %v1130_v56 = vrot.slane %v1121_v42, %v186_v12 }
  0xcb   :  { %839 = vmatpush1.bf16.msra.mxu0 %v1473_v57 }
  0xcc   :  { %1086 = vmatpush1.bf16.msra.mxu1 %v1476_v58  ;;  %840 = vmatprep.subr.bf16.mxu0 %v1481_v59  ;;  %v1113_v59 = vrot.slane %v1104_v45, %v186_v12 }
  0xcd   :  { %1087 = vmatprep.subr.bf16.mxu1 %v1484_v60 }
  0xcf   :  { %841 = vmatpush1.bf16.msra.mxu0 %v1479_v61 }
  0xd0   :  { %1088 = vmatpush1.bf16.msra.mxu1 %v1482_v62  ;;  %842 = vmatprep.subr.bf16.mxu0 %v1487_v63 }
  0xd1   :  { %1089 = vmatprep.subr.bf16.mxu1 %v1490_v0 }
  0xd3   :  { %843 = vmatpush1.bf16.msra.mxu0 %v1485_v1 }
  0xd4   :  { %1090 = vmatpush1.bf16.msra.mxu1 %v1488_v2  ;;  %844 = vmatprep.subr.bf16.mxu0 %v1493_v3 }
  0xd5   :  { %1091 = vmatprep.subr.bf16.mxu1 %v1496_v4 }
  0xd7   :  { %845 = vmatpush1.bf16.msra.mxu0 %v1491_v5 }
  0xd8   :  { %1092 = vmatpush1.bf16.msra.mxu1 %v1494_v6 }
 0x16d   :  { %v554_v18 = vpop.f32.mrb[0].mxu0 }
 0x16e   :  { %v595_v19 = vpop.f32.mrb[0].mxu1  ;;  %v555_v20 = vadd.f32 %v554_v18, %v183_v14  ;;  %v556_v22 = vpop.f32.mrb[1].mxu0 }
 0x16f   :  { %v596_v21 = vadd.f32 %v595_v19, %v191_v15  ;;  %v597_v23 = vpop.f32.mrb[1].mxu1  ;;  %v557_v24 = vadd.f32 %v556_v22, %v187_v16  ;;  %v558_v26 = vpop.f32.mrb[2].mxu0 }
 0x170   :  { %v598_v25 = vadd.f32 %v597_v23, %v195_v17  ;;  %v599_v27 = vpop.f32.mrb[2].mxu1  ;;  %v602_v28 = vmax.f32 %v555_v20, 0.0  ;;  %v559_v30 = vpop.f32.mrb[3].mxu0 }
 0x171   :  { %v604_v29 = vmax.f32 %v596_v21, 0.0  ;;  %v600_v31 = vpop.f32.mrb[3].mxu1  ;;  %v603_v32 = vmax.f32 %v557_v24, 0.0 }
 0x172   :  { %v605_v33 = vmax.f32 %v598_v25, 0.0  ;;  %v606_v37 = vpack.c.bf16 %v602_v28, %v602_v28 }
 0x173   :  { %v608_v34 = vpack.c.bf16 %v604_v29, %v604_v29  ;;  %v607_v35 = vpack.c.bf16 %v603_v32, %v603_v32 }
 0x174   :  { %v609_v36 = vpack.c.bf16 %v605_v33, %v605_v33 }
 0x175   :  { %846 = vmatprep.mubr.bf16.mxu0 %v607_v35 }
 0x176   :  { %1093 = vmatprep.mubr.bf16.mxu1 %v609_v36  ;;  %847 = vmatmul.mubr.bf16.vlgmr.msra.gmra.mrb[4].mxu0 %v606_v37 }
 0x177   :  { %1094 = vmatmul.mubr.bf16.vlgmr.msra.gmra.mrb[4].mxu1 %v608_v34 }
 0x249   :  { %v848_v46 = vpop.f32.mrb[4].mxu0 }
 0x24a   :  { %v1095_v47 = vpop.f32.mrb[4].mxu1  ;;  %v849_v48 = vadd.f32 %v848_v46, %v647_v40  ;;  %v850_v51 = vpop.f32.mrb[5].mxu0 }
 0x24b   :  { %v1096_v49 = vadd.f32 %v1095_v47, %v894_v41  ;;  %v1097_v52 = vpop.f32.mrb[5].mxu1  ;;  %v851_v54 = vadd.f32 %v850_v51, %v651_v43  ;;  %v852_v57 = vpop.f32.mrb[6].mxu0 }
 0x24c   :  { %v1098_v55 = vadd.f32 %v1097_v52, %v898_v44  ;;  %v1099_v58 = vpop.f32.mrb[6].mxu1  ;;  %v855_v60 = vmax.f32 %v849_v48, 0.0  ;;  %v853_v62 = vpop.f32.mrb[7].mxu0 }
 0x24d   :  { %v1102_v61 = vmax.f32 %v1096_v49, 0.0  ;;  %v1100_v63 = vpop.f32.mrb[7].mxu1  ;;  %v856_v0 = vmax.f32 %v851_v54, 0.0 }
 0x24e   :  { %v1103_v1 = vmax.f32 %v1098_v55, 0.0  ;;  %v1116_v3 = vmul.f32 %v1109_v53, %v855_v60 }
 0x24f   :  { %v1133_v2 = vmul.f32 %v1126_v50, %v1102_v61  ;;  %v1117_v5 = vmul.f32 %v1113_v59, %v856_v0 }
 0x250   :  { %v1134_v4 = vmul.f32 %v1130_v56, %v1103_v1 }
 0x251   :  { %v1118_v6 = vadd.f32 %v1117_v5, %v1116_v3 }
 0x252   :  { %v1135_v7 = vadd.f32 %v1134_v4, %v1133_v2 }
 0x253   :  { %1119 = vadd.xlane.f32.xlu0 %v1118_v6 }
 0x257   :  { %1136 = vadd.xlane.f32.xlu0 %v1135_v7 }
 0x2e0   :  { %v1120_v9 = vpop.xlane.xlu0 %1119 }
 0x2e1   :  { %v1145_v10 = vadd.f32 %v1293_v8, %v1120_v9 }
 0x2e3   :  { %1147 = vst.msk [vmem:[%s1805_s11] sm:$0xff] %vm1146_vm2, %v1145_v10 }
 0x2e4   :  { %v1137_v11 = vpop.xlane.xlu0 %1136 }
 0x2e5   :  { %v1155_v12 = vadd.f32 %v1293_v8, %v1137_v11 }
 0x2e7   :  { %1157 = vst.msk [vmem:[%s1805_s11] sm:$0xff] %vm1156_vm3, %v1155_v12 }
 0x2e8   :  { %1162 = vsyncpa [#allocation4], 1 }
 0x2e9   :  { %1163 = vsyncpa [#allocation6], 1 }
 0x2ea   :  { %1164 = vsyncpa [#allocation9], 1 }

</bundles_post_ra>
